<compile_context>
chip_gen: v7x
topology: tpu7x:2x2x1
jax: 0.10.0
libtpu: 0.0.40
codegen_flags: <defaults>
</compile_context>

<pallas_src>
import functools
import math

import jax
import jax.numpy as jnp
import numpy as np
from jax import lax
from jax.experimental import pallas as pl
from jax.experimental.pallas import tpu as pltpu

_TARGET_TOKENS_PER_TILE = 1024   # ~1k tokens/grid step amortizes per-step cost


# ----------------------------- Pallas kernel --------------------------------
def _proj_ln_kernel(x_ref, w_ref, gavg_ref, b_ref, gam_ref, beta_ref, o_ref,
                    *, eps):
    # x_ref   : (lane_rows, f*K)   bf16 -- f packed tokens per row, K = p*p*C taps
    # w_ref   : (f*K, f*E)         bf16 block-diagonal projection weight
    # gavg_ref: (f*E, f*E)         f32 block-diagonal per-token averaging matrix
    # b_ref / gam_ref / beta_ref : (1, f*E) f32 conv bias / LN gamma / LN beta
    # o_ref   : (lane_rows, f*E)   bf16 lane-dense output tokens
    y = jnp.dot(x_ref[...], w_ref[...], preferred_element_type=jnp.float32)
    y = y + b_ref[...]                                    # (rows, f*E) f32
    # LayerNorm stats on the MXU: every lane receives its own token's mean.
    mean = jnp.dot(y, gavg_ref[...], preferred_element_type=jnp.float32)
    d = y - mean
    var = jnp.dot(d * d, gavg_ref[...], preferred_element_type=jnp.float32)
    out = d * lax.rsqrt(var + eps) * gam_ref[...] + beta_ref[...]
    o_ref[...] = out.astype(o_ref.dtype)


# ------------------------------ tiling helper --------------------------------
def _pick_tile_rows(out_h, out_w, pack, min_tiles):
    """Pick tile_rows so tile_rows*out_w % (8*pack) == 0 (legal lane-dense
    blocks), preferring zero out_h padding, then >=min_tiles grid points
    (megacore at batch=1), then the largest tile (fewest grid steps)."""
    q = (8 * pack) // math.gcd(8 * pack, out_w)
    max_rows = max(q, (max(1, _TARGET_TOKENS_PER_TILE // max(1, out_w)) // q) * q)
    best = None
    for r in range(q, max_rows + 1, q):
        padded = ((out_h + r - 1) // r) * r
        n_tiles = padded // r
        key = (padded - out_h, 0 if n_tiles >= min_tiles else 1, -r)
        if best is None or key < best[0]:
            best = (key, r, padded, n_tiles)
    _, tile_rows, out_h_pad, n_row_tiles = best
    return tile_rows, out_h_pad, n_row_tiles


# ------------------------------ JAX wrapper ----------------------------------
def overlap_patch_embed_forward(x_nchw, conv_w, conv_b, ln_g, ln_b,
                                patch_size, stride, *, eps=1e-5,
                                out_dtype=jnp.bfloat16):
    """Matches overlap_patch_embed.forward: returns (tokens, h, w)."""
    batch, c_in, h_in, w_in = x_nchw.shape
    e = conv_w.shape[0]
    pad = patch_size // 2
    k_dim = patch_size * patch_size * c_in

    out_h = (h_in + 2 * pad - patch_size) // stride + 1
    out_w = (w_in + 2 * pad - patch_size) // stride + 1

    # Pack factor: tokens per 128-lane row (lane-dense loads/stores).
    f = max(1, 128 // math.gcd(128, e))

    min_tiles = 2 if batch == 1 else 1      # keep both v7x TensorCores busy
    tile_rows, out_h_pad, n_row_tiles = _pick_tile_rows(out_h, out_w, f, min_tiles)
    tile_tok = tile_rows * out_w
    lane_rows = tile_tok // f
    n_tiles = batch * n_row_tiles

    # --- wrapper-side tap packing (im2col): one fused XLA relayout; at these
    # channel counts the blow-up is tiny next to the token*E output stream. ---
    hp_req = (out_h_pad - 1) * stride + patch_size
    wp_req = (out_w - 1) * stride + patch_size
    x_nhwc = jnp.transpose(x_nchw, (0, 2, 3, 1))
    xp = jnp.pad(x_nhwc, ((0, 0),
                          (pad, max(0, hp_req - pad - h_in)),
                          (pad, max(0, wp_req - pad - w_in)),
                          (0, 0)))
    taps = []
    for kh in range(patch_size):
        for kw in range(patch_size):
            taps.append(xp[:, kh:kh + (out_h_pad - 1) * stride + 1:stride,
                           kw:kw + (out_w - 1) * stride + 1:stride, :])
    x_pack = jnp.concatenate(taps, axis=-1)              # (B, Hpad, W, K)
    x_pack = x_pack.reshape(n_tiles * lane_rows, f * k_dim).astype(jnp.bfloat16)

    # --- PyTorch conv weight (E,C,KH,KW) -> (K,E), then block-diagonal so the
    # f packed tokens in one row are all projected by a single matmul. ---
    w_mat = jnp.transpose(conv_w, (2, 3, 1, 0)).reshape(k_dim, e).astype(jnp.float32)
    eye_f = jnp.eye(f, dtype=jnp.float32)
    w_big = jnp.kron(eye_f, w_mat).astype(jnp.bfloat16)                 # (f*K, f*E)
    gavg = jnp.kron(eye_f, jnp.full((e, e), 1.0 / e, jnp.float32))      # (f*E, f*E)
    b_t = jnp.tile(conv_b.astype(jnp.float32), f).reshape(1, f * e)
    g_t = jnp.tile(ln_g.astype(jnp.float32), f).reshape(1, f * e)
    bt_t = jnp.tile(ln_b.astype(jnp.float32), f).reshape(1, f * e)

    # VMEM request derived from the actual block footprint (double-buffered
    # input/output + resident constants) -- safely inside v7x's 64 MiB.
    block_bytes = (2 * lane_rows * f * k_dim * 2 + 2 * lane_rows * f * e * 2
                   + w_big.size * 2 + gavg.size * 4 + 3 * f * e * 4)
    vmem_limit = int(min(32 * 1024 * 1024, max(8 * 1024 * 1024, 4 * block_bytes)))

    y = pl.pallas_call(
        functools.partial(_proj_ln_kernel, eps=eps),
        out_shape=jax.ShapeDtypeStruct((n_tiles * lane_rows, f * e), out_dtype),
        grid_spec=pltpu.PrefetchScalarGridSpec(
            num_scalar_prefetch=0,
            grid=(n_tiles,),
            in_specs=[
                # per-tile token rows (pipelined / double-buffered by Pallas)
                pl.BlockSpec((lane_rows, f * k_dim), lambda i: (i, 0)),
                # weights / averaging matrix / bias / LN params: VMEM-resident
                pl.BlockSpec((f * k_dim, f * e), lambda i: (0, 0)),
                pl.BlockSpec((f * e, f * e), lambda i: (0, 0)),
                pl.BlockSpec((1, f * e), lambda i: (0, 0)),
                pl.BlockSpec((1, f * e), lambda i: (0, 0)),
                pl.BlockSpec((1, f * e), lambda i: (0, 0)),
            ],
            out_specs=pl.BlockSpec((lane_rows, f * e), lambda i: (i, 0)),
        ),
        compiler_params=pltpu.CompilerParams(
            dimension_semantics=("parallel",),
            vmem_limit_bytes=vmem_limit),
    )(x_pack, w_big, gavg, b_t, g_t, bt_t)

    y = y.reshape(batch, out_h_pad, out_w, e)[:, :out_h]
    return y.reshape(batch, out_h * out_w, e), out_h, out_w


# ------------------------------ reference ------------------------------------
def reference_forward(x_nchw, conv_w, conv_b, ln_g, ln_b, patch_size, stride):
    pad = patch_size // 2
    y = lax.conv_general_dilated(
        x_nchw, conv_w, window_strides=(stride, stride),
        padding=((pad, pad), (pad, pad)),
        dimension_numbers=("NCHW", "OIHW", "NCHW"))
    y = y + conv_b.reshape(1, -1, 1, 1)
    b, e, h, w = y.shape
    y = jnp.transpose(y, (0, 2, 3, 1)).reshape(b, h * w, e)
    mean = jnp.mean(y, axis=-1, keepdims=True)
    var = jnp.mean((y - mean) ** 2, axis=-1, keepdims=True)
    y = (y - mean) / jnp.sqrt(var + 1e-5)
    return y * ln_g + ln_b, h, w


# -------------------------------- main ----------------------------------------
if __name__ == "__main__":
    patch_size = 3
    stride = 2
    in_chans = 4
    embed_dim = 32
    B, H, W = 2, 16, 16

    key = jax.random.PRNGKey(0)
    k_x, k_w, k_b = jax.random.split(key, 3)
    x = jax.random.normal(k_x, (B, in_chans, H, W), dtype=jnp.float32)
    fan_in = in_chans * patch_size * patch_size
    conv_w = jax.random.normal(
        k_w, (embed_dim, in_chans, patch_size, patch_size),
        dtype=jnp.float32) * (1.0 / np.sqrt(fan_in))
    conv_b = jax.random.normal(k_b, (embed_dim,), dtype=jnp.float32) * 0.01
    ln_g = jnp.ones((embed_dim,), dtype=jnp.float32)
    ln_b = jnp.zeros((embed_dim,), dtype=jnp.float32)

    out, h, w = overlap_patch_embed_forward(
        x, conv_w, conv_b, ln_g, ln_b, patch_size, stride)
    out = jax.block_until_ready(out)

    ref, rh, rw = reference_forward(
        x, conv_w, conv_b, ln_g, ln_b, patch_size, stride)
    assert (h, w) == (rh, rw), (h, w, rh, rw)
    # bf16 matmul inputs + bf16 output -> relaxed tolerance vs. f32 reference
    np.testing.assert_allclose(np.asarray(out).astype(np.float32),
                               np.asarray(ref).astype(np.float32),
                               atol=5e-2, rtol=5e-2)
    print("KERNEL_OK")
</pallas_src>

<mosaic_0001>
module attributes {stable_mosaic.version = 11 : i64} {
  func.func @_proj_ln_kernel(%arg0: i32, %arg1: memref<16x144xbf16, #tpu.memory_space<vmem>>, %arg2: memref<144x128xbf16, #tpu.memory_space<vmem>>, %arg3: memref<128x128xf32, #tpu.memory_space<vmem>>, %arg4: memref<1x128xf32, #tpu.memory_space<vmem>>, %arg5: memref<1x128xf32, #tpu.memory_space<vmem>>, %arg6: memref<1x128xf32, #tpu.memory_space<vmem>>, %arg7: memref<16x128xbf16, #tpu.memory_space<vmem>>) attributes {dimension_semantics = [#tpu.dimension_semantics<parallel>], iteration_bounds = array<i64: 2>, scalar_prefetch = 0 : i64, scratch_operands = 0 : i64, tpu.core_type = #tpu.core_type<tc>, window_params = [{transform_indices = @transform_0, window_bounds = array<i64: 16, 144>}, {pipeline_mode = #tpu.pipeline_mode<synchronous>, transform_indices = @transform_1, window_bounds = array<i64: 144, 128>}, {pipeline_mode = #tpu.pipeline_mode<synchronous>, transform_indices = @transform_2, window_bounds = array<i64: 128, 128>}, {pipeline_mode = #tpu.pipeline_mode<synchronous>, transform_indices = @transform_3, window_bounds = array<i64: 1, 128>}, {pipeline_mode = #tpu.pipeline_mode<synchronous>, transform_indices = @transform_4, window_bounds = array<i64: 1, 128>}, {pipeline_mode = #tpu.pipeline_mode<synchronous>, transform_indices = @transform_5, window_bounds = array<i64: 1, 128>}, {transform_indices = @transform_6, window_bounds = array<i64: 16, 128>}]} {
    %c0 = arith.constant 0 : index
    %c0_0 = arith.constant 0 : index
    %0 = vector.load %arg1[%c0, %c0_0] : memref<16x144xbf16, #tpu.memory_space<vmem>>, vector<16x144xbf16>
    %c0_1 = arith.constant 0 : index
    %c0_2 = arith.constant 0 : index
    %1 = vector.load %arg2[%c0_1, %c0_2] : memref<144x128xbf16, #tpu.memory_space<vmem>>, vector<144x128xbf16>
    %cst = arith.constant dense<0.000000e+00> : vector<16x128xf32>
    %2 = tpu.matmul %0, %1, %cst {dimension_numbers = #tpu.dot_dimension_numbers<[1], [0], [0], [1], [0, 0, 1, 1], [], []>} : vector<16x144xbf16>, vector<144x128xbf16>, vector<16x128xf32> -> vector<16x128xf32>
    %c0_3 = arith.constant 0 : index
    %c0_4 = arith.constant 0 : index
    %3 = vector.load %arg4[%c0_3, %c0_4] : memref<1x128xf32, #tpu.memory_space<vmem>>, vector<1x128xf32>
    %4 = vector.broadcast %3 : vector<1x128xf32> to vector<16x128xf32>
    %5 = arith.addf %2, %4 : vector<16x128xf32>
    %c0_5 = arith.constant 0 : index
    %c0_6 = arith.constant 0 : index
    %6 = vector.load %arg3[%c0_5, %c0_6] : memref<128x128xf32, #tpu.memory_space<vmem>>, vector<128x128xf32>
    %cst_7 = arith.constant dense<0.000000e+00> : vector<16x128xf32>
    %7 = tpu.matmul %5, %6, %cst_7 {dimension_numbers = #tpu.dot_dimension_numbers<[1], [0], [0], [1], [0, 0, 1, 1], [], []>} : vector<16x128xf32>, vector<128x128xf32>, vector<16x128xf32> -> vector<16x128xf32>
    %8 = arith.subf %5, %7 : vector<16x128xf32>
    %9 = arith.mulf %8, %8 : vector<16x128xf32>
    %c0_8 = arith.constant 0 : index
    %c0_9 = arith.constant 0 : index
    %10 = vector.load %arg3[%c0_8, %c0_9] : memref<128x128xf32, #tpu.memory_space<vmem>>, vector<128x128xf32>
    %cst_10 = arith.constant dense<0.000000e+00> : vector<16x128xf32>
    %11 = tpu.matmul %9, %10, %cst_10 {dimension_numbers = #tpu.dot_dimension_numbers<[1], [0], [0], [1], [0, 0, 1, 1], [], []>} : vector<16x128xf32>, vector<128x128xf32>, vector<16x128xf32> -> vector<16x128xf32>
    %cst_11 = arith.constant 9.99999974E-6 : f32
    %12 = vector.broadcast %cst_11 : f32 to vector<16x128xf32>
    %13 = arith.addf %11, %12 : vector<16x128xf32>
    %14 = math.rsqrt %13 : vector<16x128xf32>
    %15 = arith.mulf %8, %14 : vector<16x128xf32>
    %c0_12 = arith.constant 0 : index
    %c0_13 = arith.constant 0 : index
    %16 = vector.load %arg5[%c0_12, %c0_13] : memref<1x128xf32, #tpu.memory_space<vmem>>, vector<1x128xf32>
    %17 = vector.broadcast %16 : vector<1x128xf32> to vector<16x128xf32>
    %18 = arith.mulf %15, %17 : vector<16x128xf32>
    %c0_14 = arith.constant 0 : index
    %c0_15 = arith.constant 0 : index
    %19 = vector.load %arg6[%c0_14, %c0_15] : memref<1x128xf32, #tpu.memory_space<vmem>>, vector<1x128xf32>
    %20 = vector.broadcast %19 : vector<1x128xf32> to vector<16x128xf32>
    %21 = arith.addf %18, %20 : vector<16x128xf32>
    %22 = arith.truncf %21 : vector<16x128xf32> to vector<16x128xbf16>
    %c0_16 = arith.constant 0 : index
    %c0_17 = arith.constant 0 : index
    %23 = vector.load %arg7[%c0_16, %c0_17] : memref<16x128xbf16, #tpu.memory_space<vmem>>, vector<16x128xbf16>
    tpu.vector_store %arg7[%c0_16, %c0_17], %22 {strides = array<i32>} : memref<16x128xbf16, #tpu.memory_space<vmem>>, vector<16x128xbf16>,
    return
  }
  func.func @transform_0(%arg0: i32) -> (i32, i32) {
    %c0_i32 = arith.constant 0 : i32
    %c0_i32_0 = arith.constant 0 : i32
    return %arg0, %c0_i32 : i32, i32
  }
  func.func @transform_1(%arg0: i32) -> (i32, i32) {
    %c0_i32 = arith.constant 0 : i32
    %c0_i32_0 = arith.constant 0 : i32
    %c0_i32_1 = arith.constant 0 : i32
    return %c0_i32, %c0_i32_0 : i32, i32
  }
  func.func @transform_2(%arg0: i32) -> (i32, i32) {
    %c0_i32 = arith.constant 0 : i32
    %c0_i32_0 = arith.constant 0 : i32
    %c0_i32_1 = arith.constant 0 : i32
    return %c0_i32, %c0_i32_0 : i32, i32
  }
  func.func @transform_3(%arg0: i32) -> (i32, i32) {
    %c0_i32 = arith.constant 0 : i32
    %c0_i32_0 = arith.constant 0 : i32
    %c0_i32_1 = arith.constant 0 : i32
    return %c0_i32, %c0_i32_0 : i32, i32
  }
  func.func @transform_4(%arg0: i32) -> (i32, i32) {
    %c0_i32 = arith.constant 0 : i32
    %c0_i32_0 = arith.constant 0 : i32
    %c0_i32_1 = arith.constant 0 : i32
    return %c0_i32, %c0_i32_0 : i32, i32
  }
  func.func @transform_5(%arg0: i32) -> (i32, i32) {
    %c0_i32 = arith.constant 0 : i32
    %c0_i32_0 = arith.constant 0 : i32
    %c0_i32_1 = arith.constant 0 : i32
    return %c0_i32, %c0_i32_0 : i32, i32
  }
  func.func @transform_6(%arg0: i32) -> (i32, i32) {
    %c0_i32 = arith.constant 0 : i32
    %c0_i32_0 = arith.constant 0 : i32
    return %arg0, %c0_i32 : i32, i32
  }
}

</mosaic_0001>

<bundles_post_ra>
// kernel: tpu_custom_call.1
= control target key start
LH: loop header
LB: loop body
LE: loop exit
PB: predicated region body
PF: predicated region fallthrough
CT: control target
= control target key end

     0   :  { %11 = vsyncpa [#allocation3], 0  ;;  %s1522_s0 = inlined_call_operand.hbm [shape: bf16[32,144], index: 0, kind: input, shape index: {}]   ;;  %s1523_s1 = inlined_call_operand.hbm [shape: bf16[144,128], index: 1, kind: input, shape index: {}]   ;;  %s1524_s2 = inlined_call_operand.hbm [shape: f32[128,128], index: 2, kind: input, shape index: {}]   ;;  %s1525_s3 = inlined_call_operand.vmem [shape: f32[1,128], index: 3, kind: input, shape index: {}]   ;;  %s1526_s4 = inlined_call_operand.vmem [shape: f32[1,128], index: 4, kind: input, shape index: {}]   ;;  %s1527_s5 = inlined_call_operand.vmem [shape: f32[1,128], index: 5, kind: input, shape index: {}]   ;;  %s1528_s6 = inlined_call_operand.hbm [shape: bf16[32,128], index: 6, kind: output, shape index: {}]  }
   0x1   :  { %13 = vsyncpa [#allocation3 + $0x1], 0 }
   0x2   :  { %14 = vsyncpa [#allocation6], 0 }
   0x3   :  { %15 = vsyncpa [#allocation4], 0 }
   0x4   :  { %17 = vsyncpa [#allocation4 + $0x1], 0  ;;  %s1256_s21 = smov 0   ;;  %s1258_s22 = smov 0  }
   0x5   :  { %s1260_s23 = smov 0   ;;  %s1262_s24 = smov 0  }
   0x6 LB: > { %s1277_s25 = sadd.s32 4294967295, %s1208_s24   ;;  %s746_s26 = sadd.s32 4294967294, %s1208_s24   ;;  %s1208_s24 = sphi %s1262_s24, %s1548_s24   ;;  %s1204_s23 = sphi %s1260_s23, %s1547_s23   ;;  %s1200_s22 = sphi %s1258_s22, %s1546_s22   ;;  %s1196_s21 = sphi %s1256_s21, %s1545_s21  }
   0x7   : > { %p43_p0 = scmp.ne.s32.totalorder %s1200_s22, %s1196_s21  ;;  %p1529_p1 = scmp.eq.s32.totalorder %s1277_s25, 0 }
   0x8   : > { %p178_p3 = scmp.eq.s32.totalorder %s746_s26, 1  ;;  %p747_p5 = scmp.ge.s32.totalorder %s1208_s24, 1 }
   0x9   : > { %p1286_p4 = por %p1529_p1, %p43_p0  ;;  %p185_p7 = scmp.lt.s32.totalorder %s1208_s24, 3 }
   0xa   : > { %p1291_p6 = por %p178_p3, %p43_p0  ;;  %s1210_s30 = smov [#allocation5]  }
   0xb   : > { %s1532_s27 = scalar_select %p1286_p4, 1, 0 }
   0xc   : > { %s1533_s28 = scalar_select %p1291_p6, 1, 0 }
   0xd   : > { %p1296_p8 = pnand %p747_p5, %p185_p7  ;;  %s197_s7 = sshll.u32 %s1210_s30, 4  ;;  %s1300_s7 = int_to_ptr.vmem [resolvable:$true] %s197_s7 }
   0xe   : > { %s1211_s9 = smov [#allocation7]   ;;  %s1052_s13 = scalar_lea.hbm %s1523_s1, 1152 }
   0xf   : > { %p974_p9 = pneg %p1296_p8  ;;  %s210_s10 = sshll.u32 %s1211_s9, 4  ;;  %s1311_s10 = int_to_ptr.vmem [resolvable:$true] %s210_s10 }
  0x10   : > { %p1053_p12 = scmp.ne.s32.totalorder %s1523_s1, %s1052_s13  ;;  %p1059_p5 = scmp.lt.u32.totalorder %s1052_s13, %s1523_s1 }
  0x11   : > { %p1307_p11 = pnand %p974_p9, %p1529_p1 }
  0x13   : > { %p1054_p13 = pneg %p1307_p11 }
  0x15   : > { %p1055_p0 = pnand %p1054_p13, %p1053_p12 }
  0x17   : > { %p1056_p3 = pneg %p1055_p0 }
  0x19   : > { %p1061_p7 = pnand %p1059_p5, %p1056_p3 }
  0x1b   : > { %1064 = shalt.err (!%p1061_p7)
}
  0x1c   : > { %s1065_s18 = scalar_lea.vmem %s1300_s7, 1152  ;;  %p1073_p2 = scmp.lt.s32.totalorder %s1300_s7, %s1300_s7 }
  0x1d   : > { %p1066_p9 = scmp.ne.s32.totalorder %s1300_s7, %s1065_s18  ;;  %p1074_p12 = scmp.lt.s32.totalorder %s1065_s18, %s1065_s18 }
  0x1f   : > { %p1068_p10 = pnand %p1066_p9, %p1054_p13  ;;  %p1075_p0 = por %p1074_p12, %p1073_p2 }
  0x21   : > { %p1069_p1 = pneg %p1068_p10 }
  0x23   : > { %p1076_p6 = pnand %p1075_p0, %p1069_p1 }
  0x25   : > { %1079 = shalt.err (!%p1076_p6)
}
  0x26   : > { %s1212_s19 = smov 64   ;;  %s1213_s20 = smov 4  }
  0x27   : > { %977 = dma.hbm_to_vmem [thread:$0]  (!%p1307_p11), %s1523_s1, 1152, %s1300_s7, [#allocation6], %s1212_s19, %s1212_s19, %s1213_s20  }
  0x28   : > { %s1080_s12 = scalar_lea.hbm %s1524_s2, 2048 }
  0x29   : > { %p1081_p2 = scmp.ne.s32.totalorder %s1524_s2, %s1080_s12  ;;  %p1087_p10 = scmp.lt.u32.totalorder %s1080_s12, %s1524_s2 }
  0x2b   : > { %p1083_p1 = pnand %p1081_p2, %p1054_p13 }
  0x2d   : > { %p1084_p6 = pneg %p1083_p1 }
  0x2f   : > { %p1089_p3 = pnand %p1087_p10, %p1084_p6 }
  0x31   : > { %1092 = shalt.err (!%p1089_p3)
}
  0x32   : > { %s1093_s7 = scalar_lea.vmem %s1311_s10, 2048  ;;  %p1101_p12 = scmp.lt.s32.totalorder %s1311_s10, %s1311_s10 }
  0x33   : > { %p1094_p5 = scmp.ne.s32.totalorder %s1311_s10, %s1093_s7  ;;  %p1102_p0 = scmp.lt.s32.totalorder %s1093_s7, %s1093_s7 }
  0x35   : > { %p1096_p7 = pnand %p1094_p5, %p1054_p13  ;;  %p1103_p2 = por %p1102_p0, %p1101_p12 }
  0x37   : > { %p1097_p9 = pneg %p1096_p7 }
  0x39   : > { %p1104_p1 = pnand %p1103_p2, %p1097_p9 }
  0x3b   : > { %1107 = shalt.err (!%p1104_p1)
}
  0x3c   : > { %s1214_s17 = smov 128   ;;  %s1215_s18 = smov 8  }
  0x3d   : > { %980 = dma.hbm_to_vmem [thread:$0]  (!%p1307_p11), %s1524_s2, 2048, %s1311_s10, [#allocation6], %s1214_s17, %s1214_s17, %s1215_s18  }
  0x3e   : > { %s1369_s26 = sadd.s32 1, %s1208_s24   ;;  %s30_s9 = sadd.s32 1, %s1204_s23 }
  0x3f   : > { %s27_s30 = ssub.s32 %s1208_s24, %s1369_s26  ;;  %p37_p6 = scmp.ne.s32.totalorder %s1204_s23, %s1200_s22 }
  0x40   : > { %p28_p13 = scmp.eq.s32.totalorder %s27_s30, 0  ;;  %p38_p10 = scmp.eq.s32.totalorder %s1208_s24, 0 }
  0x41   : > { %p1536_p5 = scmp.eq.s32.totalorder %s1277_s25, 1  ;;  %p991_p9 = scmp.lt.s32.totalorder %s1208_s24, 2 }
  0x42   : > { %s1378_s11 = scalar_select %p28_p13, %s1204_s23, %s30_s9  }
  0x43   : > { %p39_p3 = por %p38_p10, %p37_p6  ;;  %p1382_p7 = por %p1536_p5, %p37_p6 }
  0x44   : > { %s233_s12 = sand.u32 1, %s1204_s23   ;;  %s783_s10 = sshll.u32 %s1208_s24, 8 }
  0x45   : > { %s1537_s8 = scalar_select %p1382_p7, 1, 0 }
  0x46   : > { %s751_s13 = sshll.u32 %s233_s12, 4  ;;  %s1392_s16 = scalar_lea.hbm %s1522_s0, %s783_s10 }
  0x47   : > { %s237_s7 = scalar_lea.vmem [#allocation2], %s751_s13  ;;  %p1396_p11 = pnand %p991_p9, %p39_p3 }
  0x48   : > { %s245_s19 = sshll.u32 %s237_s7, 4  ;;  %s1400_s30 = scalar_lea.sflag [#allocation3], %s233_s12  ;;  %s1394_s19 = int_to_ptr.vmem [resolvable:$true] %s245_s19 }
  0x49   : > { %s1108_s9 = scalar_lea.hbm %s1392_s16, 256  ;;  %p1110_p0 = pneg %p1396_p11 }
  0x4a   : > { %p1109_p12 = scmp.ne.s32.totalorder %s1392_s16, %s1108_s9  ;;  %s1113_s14 = scalar_lea.hbm %s1522_s0, 512 }
  0x4b   : > { %p1114_p13 = scmp.lt.u32.totalorder %s1392_s16, %s1522_s0  ;;  %p1115_p6 = scmp.lt.u32.totalorder %s1113_s14, %s1108_s9 }
  0x4c   : > { %p1111_p2 = pnand %p1110_p0, %p1109_p12  ;;  %p1117_p3 = scmp.lt.u32.totalorder %s1108_s9, %s1392_s16 }
  0x4d   : > { %p1116_p10 = por %p1115_p6, %p1114_p13 }
  0x4e   : > { %p1112_p1 = pneg %p1111_p2 }
  0x4f   : > { %p1118_p5 = por %p1117_p3, %p1116_p10 }
  0x51   : > { %p1119_p9 = pnand %p1118_p5, %p1112_p1 }
  0x53   : > { %1122 = shalt.err (!%p1119_p9)
}
  0x54   : > { %s1123_s12 = scalar_lea.vmem %s1394_s19, 256  ;;  %s1216_s13 = smov [#allocation2]  }
  0x55   : > { %p1124_p12 = scmp.ne.s32.totalorder %s1394_s19, %s1123_s12  ;;  %s1128_s10 = sshll.u32 %s1216_s13, 4  ;;  %s1129_s10 = int_to_ptr.vmem [resolvable:$false] %s1128_s10 }
  0x56   : > { %s1130_s15 = scalar_lea.vmem %s1129_s10, 512  ;;  %p1131_p4 = scmp.lt.s32.totalorder %s1394_s19, %s1129_s10 }
  0x57   : > { %p1126_p2 = pnand %p1124_p12, %p1110_p0  ;;  %p1132_p13 = scmp.lt.s32.totalorder %s1130_s15, %s1123_s12 }
  0x59   : > { %p1127_p7 = pneg %p1126_p2  ;;  %p1133_p6 = por %p1132_p13, %p1131_p4 }
  0x5b   : > { %p1134_p10 = pnand %p1133_p6, %p1127_p7 }
  0x5d   : > { %1137 = shalt.err (!%p1134_p10)
}
  0x5e   : > { %984 = dma.hbm_to_vmem [thread:$0]  (!%p1396_p11), %s1392_s16, 256, %s1394_s19, %s1400_s30, %s1214_s17, %s1214_s17, %s1215_s18  }
  0x5f   : > { %257 = sbr.rel (%p1296_p8) target bundleno = 826 (0x33a), region = 44  ;;  %s1434_s9 = sand.u32 (!%p1296_p8), 1, %s1200_s22  }
  0x60   : > { %s756_s14 = sshll.u32 (!%p1296_p8), %s1434_s9, 4  ;;  %s260_s7 = scalar_lea.sflag (!%p1296_p8), [#allocation3], %s1434_s9 }
  0x61   : > { %s1438_s12 = scalar_lea.vmem (!%p1296_p8), [#allocation2], %s756_s14  ;;  %p1539_p4 = scmp.ne.s32.totalorder (!%p1296_p8), %s1532_s27, 0 }
  0x66   : > { %1183 = dma.done.wait (%p1539_p4), %s260_s7, 256  }
  0x67   : > { %1185 = vsyncadd (%p1539_p4), %s260_s7, 4294967040  ;;  %p1540_p7 = scmp.eq.s32.totalorder %s1277_s25, 0 }
  0x69   : > { %1187 = dma.done.wait (%p1540_p7), [#allocation6], 3200   ;;  %p1541_p8 = pmov %p1540_p7 }
  0x6a   : > { %v1217_v0 = vmov 0   ;;  %v1036_v1 = vld [vmem:[#allocation5] sm:$0xff]   ;;  %v1037_v2 = vld [vmem:[#allocation5 + $0x8] sm:$0xff]   ;;  %v1038_v3 = vld [vmem:[#allocation5 + $0x10] sm:$0xff]   ;;  %vm393_vm0 = vcmask 130048   ;;  %s759_s17 = sshll.u32 %s1434_s9, 3 }
  0x6b   : > { %1189 = vsyncadd (%p1541_p8), [#allocation6], 4294964096  ;;  %397 = vmatprep.subr.bf16.mxu0 %v1217_v0  ;;  %v1039_v4 = vld [vmem:[#allocation5 + $0x18] sm:$0xff]   ;;  %v438_v6 = vld [vmem:[#allocation7] sm:$0xff]  ;;  %s786_s30 = sshll.u32 %s1277_s25, 7  ;;  %s299_s13 = scalar_lea.vmem [#allocation8], %s759_s17 }
  0x6c   : > { %398 = vmatpush1.bf16.msra.mxu0 %v1036_v1  ;;  %v1047_v5 = vld [vmem:[%s1438_s12 + $0x4] ss:$8 sps:$4 sm:$0xff]   ;;  %v1045_v32 = vld [vmem:[%s1438_s12] ss:$8 sps:$4 sm:$0xff]   ;;  %s654_s10 = sshll.u32 %s299_s13, 4  ;;  %s1476_s7 = scalar_lea.hbm %s1528_s6, %s786_s30  ;;  %s1478_s10 = int_to_ptr.vmem [resolvable:$true] %s654_s10 }
  0x6d   : > { %399 = vmatprep.subr.bf16.mxu0 %v1217_v0  ;;  %v439_v7 = vld [vmem:[#allocation7 + $0x8] sm:$0xff]  ;;  %v440_v9 = vld [vmem:[#allocation7 + $0x10] sm:$0xff]  ;;  %v441_v10 = vld [vmem:[#allocation7 + $0x18] sm:$0xff]  ;;  %772 = vmatprep.mubr.msk.bf16.mxu0 %vm393_vm0, %v1047_v5  ;;  %s641_s12 = scalar_lea.sflag [#allocation4], %s1434_s9  ;;  %s1138_s27 = scalar_lea.vmem %s1478_s10, 128 }
  0x6e   : > { %v1449_v8 = vpack.c.bf16 %v439_v7, %v438_v6  ;;  %v1451_v11 = vpack.c.bf16 %v441_v10, %v440_v9  ;;  %v442_v12 = vld [vmem:[#allocation7 + $0x20] sm:$0xff]  ;;  %v443_v13 = vld [vmem:[#allocation7 + $0x28] sm:$0xff]  ;;  %v1040_v14 = vld [vmem:[#allocation5 + $0x20] sm:$0xff]   ;;  %p1139_p11 = scmp.ne.s32.totalorder %s1478_s10, %s1138_s27  ;;  %p1542_p0 = scmp.ne.s32.totalorder %s1537_s8, 0 }
  0x6f   : > { %v906_v15 = vpack.c.bf16 %v443_v13, %v442_v12  ;;  %v444_v16 = vld [vmem:[#allocation7 + $0x30] sm:$0xff]  ;;  %v445_v17 = vld [vmem:[#allocation7 + $0x38] sm:$0xff]  ;;  %v1041_v18 = vld [vmem:[#allocation5 + $0x28] sm:$0xff]   ;;  %s1218_s25 = smov [#allocation8]  }
  0x70   : > { %400 = vmatpush1.bf16.msra.mxu0 %v1037_v2  ;;  %899 = vmatprep.subr.bf16.mxu1 %v1449_v8  ;;  %v910_v19 = vpack.c.bf16 %v445_v17, %v444_v16  ;;  %v446_v20 = vld [vmem:[#allocation7 + $0x40] sm:$0xff]  ;;  %v447_v21 = vld [vmem:[#allocation7 + $0x48] sm:$0xff]  ;;  %v448_v24 = vld [vmem:[#allocation7 + $0x50] sm:$0xff]  ;;  %p1140_p1 = pnand %p1139_p11, %p1542_p0  ;;  %s1142_s29 = sshll.u32 %s1218_s25, 4  ;;  %s1143_s29 = int_to_ptr.vmem [resolvable:$false] %s1142_s29 }
  0x71   : > { %401 = vmatprep.subr.bf16.mxu0 %v1217_v0  ;;  %901 = vmatpush3.bf16.msra.mxu1 %v1449_v8  ;;  %v1042_v22 = vld [vmem:[#allocation5 + $0x30] sm:$0xff]   ;;  %v914_v23 = vpack.c.bf16 %v447_v21, %v446_v20  ;;  %v449_v25 = vld [vmem:[#allocation7 + $0x58] sm:$0xff]  ;;  %v1043_v26 = vld [vmem:[#allocation5 + $0x38] sm:$0xff]   ;;  %s1144_s17 = scalar_lea.vmem %s1143_s29, 256  ;;  %p1145_p5 = scmp.lt.s32.totalorder %s1478_s10, %s1143_s29 }
  0x72   : > { %903 = vmatprep.subr.bf16.mxu1 %v1451_v11  ;;  %v918_v27 = vpack.c.bf16 %v449_v25, %v448_v24  ;;  %v450_v28 = vld [vmem:[#allocation7 + $0x60] sm:$0xff]  ;;  %v451_v29 = vld [vmem:[#allocation7 + $0x68] sm:$0xff]  ;;  %v1044_v30 = vld [vmem:[#allocation5 + $0x40] sm:$0xff]   ;;  %p1141_p3 = pneg %p1140_p1  ;;  %p1146_p9 = scmp.lt.s32.totalorder %s1144_s17, %s1138_s27 }
  0x73   : > { %v922_v31 = vpack.c.bf16 %v451_v29, %v450_v28  ;;  %v452_v33 = vld [vmem:[#allocation7 + $0x70] sm:$0xff]  ;;  %v453_v34 = vld [vmem:[#allocation7 + $0x78] sm:$0xff] }
  0x74   : > { %402 = vmatpush1.bf16.msra.mxu0 %v1038_v3  ;;  %v926_v35 = vpack.c.bf16 %v453_v34, %v452_v33  ;;  %v760_v36 = vld [vmem:[%s1525_s3] ss:$0 sm:$0xff]  ;;  %p1147_p12 = por %p1146_p9, %p1145_p5 }
  0x75   : > { %403 = vmatprep.subr.bf16.mxu0 %v1217_v0  ;;  %905 = vmatpush3.bf16.msra.mxu1 %v1451_v11  ;;  %v773_v54 = vld [vmem:[%s1526_s4] ss:$0 sm:$0xff] }
  0x76   : > { %907 = vmatprep.subr.bf16.mxu1 %v906_v15  ;;  %v774_v57 = vld [vmem:[%s1527_s5] ss:$0 sm:$0xff]  ;;  %p1148_p2 = pnand %p1147_p12, %p1141_p3 }
  0x78   : > { %404 = vmatpush1.bf16.msra.mxu0 %v1039_v4 }
  0x79   : > { %405 = vmatprep.subr.bf16.mxu0 %v1217_v0  ;;  %909 = vmatpush3.bf16.msra.mxu1 %v906_v15 }
  0x7a   : > { %911 = vmatprep.subr.bf16.mxu1 %v910_v19 }
  0x7c   : > { %406 = vmatpush1.bf16.msra.mxu0 %v1040_v14 }
  0x7d   : > { %407 = vmatprep.subr.bf16.mxu0 %v1217_v0  ;;  %913 = vmatpush3.bf16.msra.mxu1 %v910_v19 }
  0x7e   : > { %915 = vmatprep.subr.bf16.mxu1 %v914_v23 }
  0x80   : > { %408 = vmatpush1.bf16.msra.mxu0 %v1041_v18 }
  0x81   : > { %409 = vmatprep.subr.bf16.mxu0 %v1217_v0  ;;  %917 = vmatpush3.bf16.msra.mxu1 %v914_v23 }
  0x82   : > { %919 = vmatprep.subr.bf16.mxu1 %v918_v27 }
  0x84   : > { %410 = vmatpush1.bf16.msra.mxu0 %v1042_v22 }
  0x85   : > { %411 = vmatprep.subr.bf16.mxu0 %v1217_v0  ;;  %921 = vmatpush3.bf16.msra.mxu1 %v918_v27 }
  0x86   : > { %923 = vmatprep.subr.bf16.mxu1 %v922_v31 }
  0x88   : > { %412 = vmatpush1.bf16.msra.mxu0 %v1043_v26 }
  0x89   : > { %413 = vmatprep.subr.bf16.mxu0 %v1217_v0  ;;  %925 = vmatpush3.bf16.msra.mxu1 %v922_v31 }
  0x8a   : > { %927 = vmatprep.subr.bf16.mxu1 %v926_v35 }
  0x8c   : > { %414 = vmatpush1.bf16.msra.mxu0 %v1044_v30 }
  0x8d   : > { %929 = vmatpush3.bf16.msra.mxu1 %v926_v35 }
  0x8e   : > { %931 = vmatprep.subr.bf16.mxu1 %v1449_v8 }
  0x8f   : > { %430 = vmatmul.mubr.bf16.vlgmr.msra.gmra.mrb[0].mxu0 %v1045_v32 }
 0x162   : > { %v431_v37 = vpop.f32.mrb[0].mxu0 }
 0x163   : > { %v432_v38 = vadd.f32 %v760_v36, %v431_v37  ;;  %v433_v39 = vpop.f32.mrb[1].mxu0 }
 0x164   : > { %v434_v40 = vpop.f32.mrb[2].mxu0 }
 0x165   : > { %v435_v41 = vadd.f32 %v760_v36, %v434_v40  ;;  %v436_v42 = vpop.f32.mrb[3].mxu0  ;;  %860 = vmatprep.mubr.f32.mxu1 %v432_v38 }
 0x167   : > { %861 = vmatmul.mubr.f32.vlgmr.msra.gmra.mrb[0].mxu1 %v435_v41 }
 0x168   : > { %933 = vmatpush3.bf16.msra.mxu1 %v1449_v8 }
 0x169   : > { %935 = vmatprep.subr.bf16.mxu1 %v1451_v11 }
 0x16c   : > { %937 = vmatpush3.bf16.msra.mxu1 %v1451_v11 }
 0x16d   : > { %939 = vmatprep.subr.bf16.mxu1 %v906_v15 }
 0x170   : > { %941 = vmatpush3.bf16.msra.mxu1 %v906_v15 }
 0x171   : > { %943 = vmatprep.subr.bf16.mxu1 %v910_v19 }
 0x174   : > { %945 = vmatpush3.bf16.msra.mxu1 %v910_v19 }
 0x175   : > { %947 = vmatprep.subr.bf16.mxu1 %v914_v23 }
 0x178   : > { %949 = vmatpush3.bf16.msra.mxu1 %v914_v23 }
 0x179   : > { %951 = vmatprep.subr.bf16.mxu1 %v918_v27 }
 0x17c   : > { %953 = vmatpush3.bf16.msra.mxu1 %v918_v27 }
 0x17d   : > { %955 = vmatprep.subr.bf16.mxu1 %v922_v31 }
 0x180   : > { %957 = vmatpush3.bf16.msra.mxu1 %v922_v31 }
 0x181   : > { %959 = vmatprep.subr.bf16.mxu1 %v926_v35 }
 0x184   : > { %961 = vmatpush3.bf16.msra.mxu1 %v926_v35 }
 0x23a   : > { %v862_v43 = vpop.f32.mrb[0].mxu1 }
 0x23b   : > { %v530_v44 = vsub.f32 %v435_v41, %v862_v43  ;;  %v520_v45 = vpop.f32.mrb[1].mxu1 }
 0x23c   : > { %v529_v46 = vsub.f32 %v432_v38, %v520_v45 }
 0x23d   : > { %v532_v48 = vmul.f32 %v530_v44, %v530_v44 }
 0x23e   : > { %v531_v47 = vmul.f32 %v529_v46, %v529_v46 }
 0x240   : > { %895 = vmatprep.mubr.f32.mxu1 %v531_v47 }
 0x241   : > { %896 = vmatmul.mubr.f32.vlgmr.msra.gmra.mrb[2].mxu1 %v532_v48 }
 0x314   : > { %v897_v49 = vpop.f32.mrb[2].mxu1 }
 0x315   : > { %v605_v50 = vadd.f32 1e-05, %v897_v49  ;;  %v599_v51 = vpop.f32.mrb[3].mxu1 }
 0x316   : > { %v600_v52 = vadd.f32 1e-05, %v599_v51 }
 0x317   : > { %1048 = vrsqrt.f32 %v605_v50 }
 0x318   : > { %1050 = vrsqrt.f32 %v600_v52 }
 0x321   : > { %v1049_v53 = vpop.eup %1048 }
 0x322   : > { %v1051_v55 = vpop.eup %1050  ;;  %v611_v56 = vmul.f32 %v1049_v53, %v530_v44 }
 0x323   : > { %v610_v58 = vmul.f32 %v1051_v55, %v529_v46 }
 0x324   : > { %v620_v59 = vmul.f32 %v773_v54, %v611_v56 }
 0x325   : > { %v619_v60 = vmul.f32 %v773_v54, %v610_v58 }
 0x326   : > { %v629_v61 = vadd.f32 %v774_v57, %v620_v59 }
 0x327   : > { %v628_v62 = vadd.f32 %v774_v57, %v619_v60 }
 0x329   : > { %v790_v63 = vpack.c.bf16 %v629_v61, %v628_v62 }
 0x32b   : > { %791 = vst [vmem:[%s299_s13] sm:$0xff] %v790_v63  }
 0x32c   : > { %1151 = shalt.err (!%p1148_p2)
}
 0x32d   : > { %s1152_s18 = scalar_lea.hbm %s1476_s7, 128  ;;  %s1156_s20 = scalar_lea.hbm %s1528_s6, 256 }
 0x32e   : > { %p1153_p13 = scmp.ne.s32.totalorder %s1476_s7, %s1152_s18  ;;  %p1157_p4 = scmp.lt.u32.totalorder %s1476_s7, %s1528_s6 }
 0x32f   : > { %p1158_p7 = scmp.lt.u32.totalorder %s1156_s20, %s1152_s18  ;;  %p1160_p11 = scmp.lt.u32.totalorder %s1152_s18, %s1476_s7 }
 0x330   : > { %p1154_p6 = pnand %p1153_p13, %p1542_p0 }
 0x331   : > { %p1159_p8 = por %p1158_p7, %p1157_p4 }
 0x332   : > { %p1155_p10 = pneg %p1154_p6 }
 0x333   : > { %p1161_p1 = por %p1160_p11, %p1159_p8 }
 0x335   : > { %p1162_p3 = pnand %p1161_p1, %p1155_p10 }
 0x337   : > { %1165 = shalt.err (!%p1162_p3)
}
 0x338   : > { %s1219_s15 = smov 64   ;;  %s1220_s14 = smov 4  }
 0x339   : > { %972 = dma.vmem_to_hbm [thread:$0]  (%p1542_p0), %s1478_s10, 128, %s1476_s7, %s641_s12, %s1219_s15, %s1219_s15, %s1220_s14  }
 0x33a PF: > { %s669_s27 = sand.u32 1, %s1196_s21   ;;  %p1543_p5 = scmp.ne.s32.totalorder %s1533_s28, 0 }
 0x33b   : > { %p1544_p9 = scmp.ge.s32.totalorder %s1208_s24, 2  ;;  %s670_s25 = scalar_lea.sflag [#allocation4], %s669_s27 }
 0x33d   : > { %p986_p12 = pnand %p1544_p9, %p1543_p5 }
 0x33f   : > { %1191 = dma.done.wait (!%p986_p12), %s670_s25, 128  }
 0x340   : > { %1193 = vsyncadd (!%p986_p12), %s670_s25, 4294967168  ;;  %p20_p2 = scmp.ge.s32.totalorder %s1369_s26, 4   ;;  %s1545_s21 = smov %s1200_s22 }
 0x341   : > { %s1546_s22 = smov %s1204_s23  ;;  %s1547_s23 = smov %s1378_s11 }
 0x342   : > { %s1548_s24 = smov %s1369_s26  ;;  %22 = sbr.rel (!%p20_p2) target bundleno = 6 (0x6), region = 97 }
 0x349   :  { %675 = vsyncpa [#allocation3], 1 }
 0x34a   :  { %677 = vsyncpa [#allocation3 + $0x1], 1 }
 0x34b   :  { %678 = vsyncpa [#allocation6], 1 }
 0x34c   :  { %679 = vsyncpa [#allocation4], 1 }
 0x34d   :  { %681 = vsyncpa [#allocation4 + $0x1], 1 }

</bundles_post_ra>
